<compile_context>
chip_gen: v5e
topology: v5e:2x2
jax: 0.10.0
libtpu: 0.0.40
codegen_flags: <defaults>
</compile_context>

<pallas_src>
import functools

import jax
import jax.numpy as jnp
from jax.experimental import pallas as pl
from jax.experimental.pallas import tpu as pltpu

_LANES = 128
_SUBLANES = 8


def _round_up(n, m):
    return ((n + m - 1) // m) * m


def pack_params(w_ih, w_hh, b_ih, b_hh, w_fc, b_fc):
    """One-time OFFLINE packing of the five static parameter tensors into a
    single (8,128)-tile-aligned f32 slab (one DMA instead of six operands).
    The two RNN biases are fused here, so the per-call path does no math.

      w_ih: (A, H) == torch weight_ih_l0.T
      w_hh: (H, H) == torch weight_hh_l0.T
      w_fc: (H, A) == torch fc.weight.T
    """
    A, H = w_ih.shape
    assert w_hh.shape == (H, H) and w_fc.shape == (H, A)

    off_ih = 0
    off_hh = off_ih + _round_up(A, _SUBLANES)
    off_b = off_hh + _round_up(H, _SUBLANES)
    off_fc = off_b + _SUBLANES
    off_bfc = off_fc + _round_up(H, _SUBLANES)
    total = off_bfc + _SUBLANES

    slab = jnp.zeros((total, _LANES), jnp.float32)
    slab = slab.at[off_ih:off_ih + A, :H].set(w_ih)
    slab = slab.at[off_hh:off_hh + H, :H].set(w_hh)
    slab = slab.at[off_b, :H].set((b_ih + b_hh).reshape(H))   # fused bias, offline
    slab = slab.at[off_fc:off_fc + H, :A].set(w_fc)
    slab = slab.at[off_bfc, :A].set(b_fc.reshape(A))

    layout = dict(A=A, H=H, off_ih=off_ih, off_hh=off_hh, off_b=off_b,
                  off_fc=off_fc, off_bfc=off_bfc)
    return slab, layout


def _rnn_kernel(x_ref, p_ref, out_ref, *, A, H,
                off_ih, off_hh, off_b, off_fc, off_bfc):
    B, T, _ = x_ref.shape

    # --- Unpack the parameter slab with static slices (no extra DMAs). ------
    # Weights cast to bf16 once so every MXU op is a single-pass bf16 matmul;
    # biases and all VPU/EUP work stay f32 (v5e has no bf16 VPU/EUP path).
    w_ih = p_ref[off_ih:off_ih + A, :H].astype(jnp.bfloat16)      # (A, H)
    w_hh = p_ref[off_hh:off_hh + H, :H].astype(jnp.bfloat16)      # (H, H)
    bias = p_ref[off_b:off_b + 1, :H]                             # (1, H) f32
    w_fc = p_ref[off_fc:off_fc + H, :A].astype(jnp.bfloat16)      # (H, A)
    b_fc = p_ref[off_bfc:off_bfc + 1, :A]                         # (1, A) f32

    # --- Hoisted input projection (off the serial dependency chain). --------
    # ONE (B*T, A) @ (A, H) matmul with the pre-fused bias, f32 accumulation.
    # Reshapes are layout-friendly here (sublane dim stays a multiple of 8
    # because T == 8; other T remain correct, just with a relayout copy).
    x2d = x_ref[...].reshape(B * T, A).astype(jnp.bfloat16)
    x_proj = (jnp.dot(x2d, w_ih, preferred_element_type=jnp.float32)
              + bias).reshape(B, T, H)

    # --- Recurrence: h carried in vregs, fully unrolled (static T). ---------
    # Serial work per step: one bf16 cast + one single-pass h @ w_hh (MXU)
    # + one tanh (EUP).  The x_proj[:, t, :] gathers are independent of h and
    # get hoisted off the chain by the scheduler.
    h = jnp.zeros((B, H), jnp.float32)
    for t in range(T):
        hw = jnp.dot(h.astype(jnp.bfloat16), w_hh,
                     preferred_element_type=jnp.float32)
        h = jnp.tanh(x_proj[:, t, :] + hw)

    # --- Final projection + numerically stable softmax epilogue. ------------
    logits = (jnp.dot(h.astype(jnp.bfloat16), w_fc,
                      preferred_element_type=jnp.float32) + b_fc)   # (B, A)
    m = jnp.max(logits, axis=1, keepdims=True)
    e = jnp.exp(logits - m)
    denom = jnp.sum(e, axis=1, keepdims=True)
    # Division -> EUP reciprocal + VPU multiply (cheaper exposed epilogue).
    out_ref[...] = e * pl.reciprocal(denom, approx=True)


def rnn_forward(x_bta, packed_params, layout):
    """x_bta: (B, T, A) float32, batch-first (as the PyTorch module uses).
    packed_params / layout come from pack_params() (built once, offline).
    Returns softmax probabilities of shape (B, A)."""
    B, _, A = x_bta.shape
    kernel = functools.partial(_rnn_kernel, **layout)
    vmem = pl.BlockSpec(memory_space=pltpu.MemorySpace.VMEM)
    # Perf note (v7x): if B grows beyond toy size, add a batch grid axis with
    # dimension_semantics=("parallel",) so both TensorCores split the batch.
    return pl.pallas_call(
        kernel,
        out_shape=jax.ShapeDtypeStruct((B, A), jnp.float32),
        in_specs=[vmem, vmem],          # x + one packed param slab: 2 inputs
        out_specs=vmem,
    )(x_bta, packed_params)


def reference_forward(x_bta, w_ih, w_hh, b_ih, b_hh, w_fc, b_fc):
    B, T, A = x_bta.shape
    H = w_hh.shape[0]
    h = jnp.zeros((B, H), jnp.float32)
    for t in range(T):
        h = jnp.tanh(x_bta[:, t, :] @ w_ih + h @ w_hh + b_ih + b_hh)
    logits = h @ w_fc + b_fc
    return jax.nn.softmax(logits, axis=1)


if __name__ == "__main__":
    B, T, A, H = 2, 8, 4, 32   # batch, seq_len, assets_num, hidden_size

    key = jax.random.PRNGKey(0)
    ks = jax.random.split(key, 7)
    scale = 1.0 / jnp.sqrt(H)
    x = jax.random.normal(ks[0], (B, T, A), jnp.float32)
    w_ih = jax.random.uniform(ks[1], (A, H), jnp.float32, -scale, scale)
    w_hh = jax.random.uniform(ks[2], (H, H), jnp.float32, -scale, scale)
    b_ih = jax.random.uniform(ks[3], (1, H), jnp.float32, -scale, scale)
    b_hh = jax.random.uniform(ks[4], (1, H), jnp.float32, -scale, scale)
    w_fc = jax.random.uniform(ks[5], (H, A), jnp.float32, -scale, scale)
    b_fc = jax.random.uniform(ks[6], (1, A), jnp.float32, -scale, scale)

    # One-time offline parameter packing (NOT in the per-call path).
    packed, layout = pack_params(w_ih, w_hh, b_ih, b_hh, w_fc, b_fc)
    packed = jax.block_until_ready(packed)

    out = rnn_forward(x, packed, layout)
    jax.block_until_ready(out)

    ref = reference_forward(x, w_ih, w_hh, b_ih, b_hh, w_fc, b_fc)
    assert out.shape == (B, A)
    # bf16 MXU operands + approx reciprocal loosen the tolerance vs f32 ref.
    assert jnp.allclose(out, ref, atol=2e-2, rtol=0.0), "mismatch vs reference"
    assert jnp.allclose(jnp.sum(out, axis=1), 1.0, atol=5e-3)

    print("KERNEL_OK")
</pallas_src>

<mosaic_0001>
module attributes {stable_mosaic.version = 11 : i64} {
  func.func @_rnn_kernel(%arg0: memref<2x8x4xf32, #tpu.memory_space<vmem>>, %arg1: memref<88x128xf32, #tpu.memory_space<vmem>>, %arg2: memref<2x4xf32, #tpu.memory_space<vmem>>) attributes {dimension_semantics = [], scalar_prefetch = 0 : i64, scratch_operands = 0 : i64, tpu.core_type = #tpu.core_type<tc>} {
    %c0 = arith.constant 0 : index
    %c0_0 = arith.constant 0 : index
    %0 = vector.load %arg1[%c0, %c0_0] : memref<88x128xf32, #tpu.memory_space<vmem>>, vector<4x32xf32>
    %1 = arith.truncf %0 : vector<4x32xf32> to vector<4x32xbf16>
    %c8 = arith.constant 8 : index
    %c0_1 = arith.constant 0 : index
    %2 = vector.load %arg1[%c8, %c0_1] : memref<88x128xf32, #tpu.memory_space<vmem>>, vector<32x32xf32>
    %3 = arith.truncf %2 : vector<32x32xf32> to vector<32x32xbf16>
    %c40 = arith.constant 40 : index
    %c0_2 = arith.constant 0 : index
    %4 = vector.load %arg1[%c40, %c0_2] : memref<88x128xf32, #tpu.memory_space<vmem>>, vector<1x32xf32>
    %c48 = arith.constant 48 : index
    %c0_3 = arith.constant 0 : index
    %5 = vector.load %arg1[%c48, %c0_3] : memref<88x128xf32, #tpu.memory_space<vmem>>, vector<32x4xf32>
    %6 = arith.truncf %5 : vector<32x4xf32> to vector<32x4xbf16>
    %c80 = arith.constant 80 : index
    %c0_4 = arith.constant 0 : index
    %7 = vector.load %arg1[%c80, %c0_4] : memref<88x128xf32, #tpu.memory_space<vmem>>, vector<1x4xf32>
    %c0_5 = arith.constant 0 : index
    %c0_6 = arith.constant 0 : index
    %c0_7 = arith.constant 0 : index
    %8 = vector.load %arg0[%c0_5, %c0_6, %c0_7] : memref<2x8x4xf32, #tpu.memory_space<vmem>>, vector<2x8x4xf32>
    %9 = vector.shape_cast %8 : vector<2x8x4xf32> to vector<16x4xf32>
    %10 = arith.truncf %9 : vector<16x4xf32> to vector<16x4xbf16>
    %cst = arith.constant dense<0.000000e+00> : vector<16x32xf32>
    %11 = tpu.matmul %10, %1, %cst {dimension_numbers = #tpu.dot_dimension_numbers<[1], [0], [0], [1], [0, 0, 1, 1], [], []>} : vector<16x4xbf16>, vector<4x32xbf16>, vector<16x32xf32> -> vector<16x32xf32>
    %12 = vector.broadcast %4 : vector<1x32xf32> to vector<16x32xf32>
    %13 = arith.addf %11, %12 : vector<16x32xf32>
    %14 = vector.shape_cast %13 : vector<16x32xf32> to vector<2x8x32xf32>
    %cst_8 = arith.constant 0.000000e+00 : f32
    %15 = vector.broadcast %cst_8 : f32 to vector<2x32xf32>
    %16 = arith.truncf %15 : vector<2x32xf32> to vector<2x32xbf16>
    %cst_9 = arith.constant dense<0.000000e+00> : vector<2x32xf32>
    %17 = tpu.matmul %16, %3, %cst_9 {dimension_numbers = #tpu.dot_dimension_numbers<[1], [0], [0], [1], [0, 0, 1, 1], [], []>} : vector<2x32xbf16>, vector<32x32xbf16>, vector<2x32xf32> -> vector<2x32xf32>
    %18 = vector.extract_strided_slice %14 {offsets = [0, 0, 0], sizes = [2, 1, 32], strides = [1, 1, 1]} : vector<2x8x32xf32> to vector<2x1x32xf32>
    %19 = vector.shape_cast %18 : vector<2x1x32xf32> to vector<2x32xf32>
    %20 = arith.addf %19, %17 : vector<2x32xf32>
    %21 = math.tanh %20 : vector<2x32xf32>
    %22 = arith.truncf %21 : vector<2x32xf32> to vector<2x32xbf16>
    %cst_10 = arith.constant dense<0.000000e+00> : vector<2x32xf32>
    %23 = tpu.matmul %22, %3, %cst_10 {dimension_numbers = #tpu.dot_dimension_numbers<[1], [0], [0], [1], [0, 0, 1, 1], [], []>} : vector<2x32xbf16>, vector<32x32xbf16>, vector<2x32xf32> -> vector<2x32xf32>
    %24 = vector.extract_strided_slice %14 {offsets = [0, 1, 0], sizes = [2, 1, 32], strides = [1, 1, 1]} : vector<2x8x32xf32> to vector<2x1x32xf32>
    %25 = vector.shape_cast %24 : vector<2x1x32xf32> to vector<2x32xf32>
    %26 = arith.addf %25, %23 : vector<2x32xf32>
    %27 = math.tanh %26 : vector<2x32xf32>
    %28 = arith.truncf %27 : vector<2x32xf32> to vector<2x32xbf16>
    %cst_11 = arith.constant dense<0.000000e+00> : vector<2x32xf32>
    %29 = tpu.matmul %28, %3, %cst_11 {dimension_numbers = #tpu.dot_dimension_numbers<[1], [0], [0], [1], [0, 0, 1, 1], [], []>} : vector<2x32xbf16>, vector<32x32xbf16>, vector<2x32xf32> -> vector<2x32xf32>
    %30 = vector.extract_strided_slice %14 {offsets = [0, 2, 0], sizes = [2, 1, 32], strides = [1, 1, 1]} : vector<2x8x32xf32> to vector<2x1x32xf32>
    %31 = vector.shape_cast %30 : vector<2x1x32xf32> to vector<2x32xf32>
    %32 = arith.addf %31, %29 : vector<2x32xf32>
    %33 = math.tanh %32 : vector<2x32xf32>
    %34 = arith.truncf %33 : vector<2x32xf32> to vector<2x32xbf16>
    %cst_12 = arith.constant dense<0.000000e+00> : vector<2x32xf32>
    %35 = tpu.matmul %34, %3, %cst_12 {dimension_numbers = #tpu.dot_dimension_numbers<[1], [0], [0], [1], [0, 0, 1, 1], [], []>} : vector<2x32xbf16>, vector<32x32xbf16>, vector<2x32xf32> -> vector<2x32xf32>
    %36 = vector.extract_strided_slice %14 {offsets = [0, 3, 0], sizes = [2, 1, 32], strides = [1, 1, 1]} : vector<2x8x32xf32> to vector<2x1x32xf32>
    %37 = vector.shape_cast %36 : vector<2x1x32xf32> to vector<2x32xf32>
    %38 = arith.addf %37, %35 : vector<2x32xf32>
    %39 = math.tanh %38 : vector<2x32xf32>
    %40 = arith.truncf %39 : vector<2x32xf32> to vector<2x32xbf16>
    %cst_13 = arith.constant dense<0.000000e+00> : vector<2x32xf32>
    %41 = tpu.matmul %40, %3, %cst_13 {dimension_numbers = #tpu.dot_dimension_numbers<[1], [0], [0], [1], [0, 0, 1, 1], [], []>} : vector<2x32xbf16>, vector<32x32xbf16>, vector<2x32xf32> -> vector<2x32xf32>
    %42 = vector.extract_strided_slice %14 {offsets = [0, 4, 0], sizes = [2, 1, 32], strides = [1, 1, 1]} : vector<2x8x32xf32> to vector<2x1x32xf32>
    %43 = vector.shape_cast %42 : vector<2x1x32xf32> to vector<2x32xf32>
    %44 = arith.addf %43, %41 : vector<2x32xf32>
    %45 = math.tanh %44 : vector<2x32xf32>
    %46 = arith.truncf %45 : vector<2x32xf32> to vector<2x32xbf16>
    %cst_14 = arith.constant dense<0.000000e+00> : vector<2x32xf32>
    %47 = tpu.matmul %46, %3, %cst_14 {dimension_numbers = #tpu.dot_dimension_numbers<[1], [0], [0], [1], [0, 0, 1, 1], [], []>} : vector<2x32xbf16>, vector<32x32xbf16>, vector<2x32xf32> -> vector<2x32xf32>
    %48 = vector.extract_strided_slice %14 {offsets = [0, 5, 0], sizes = [2, 1, 32], strides = [1, 1, 1]} : vector<2x8x32xf32> to vector<2x1x32xf32>
    %49 = vector.shape_cast %48 : vector<2x1x32xf32> to vector<2x32xf32>
    %50 = arith.addf %49, %47 : vector<2x32xf32>
    %51 = math.tanh %50 : vector<2x32xf32>
    %52 = arith.truncf %51 : vector<2x32xf32> to vector<2x32xbf16>
    %cst_15 = arith.constant dense<0.000000e+00> : vector<2x32xf32>
    %53 = tpu.matmul %52, %3, %cst_15 {dimension_numbers = #tpu.dot_dimension_numbers<[1], [0], [0], [1], [0, 0, 1, 1], [], []>} : vector<2x32xbf16>, vector<32x32xbf16>, vector<2x32xf32> -> vector<2x32xf32>
    %54 = vector.extract_strided_slice %14 {offsets = [0, 6, 0], sizes = [2, 1, 32], strides = [1, 1, 1]} : vector<2x8x32xf32> to vector<2x1x32xf32>
    %55 = vector.shape_cast %54 : vector<2x1x32xf32> to vector<2x32xf32>
    %56 = arith.addf %55, %53 : vector<2x32xf32>
    %57 = math.tanh %56 : vector<2x32xf32>
    %58 = arith.truncf %57 : vector<2x32xf32> to vector<2x32xbf16>
    %cst_16 = arith.constant dense<0.000000e+00> : vector<2x32xf32>
    %59 = tpu.matmul %58, %3, %cst_16 {dimension_numbers = #tpu.dot_dimension_numbers<[1], [0], [0], [1], [0, 0, 1, 1], [], []>} : vector<2x32xbf16>, vector<32x32xbf16>, vector<2x32xf32> -> vector<2x32xf32>
    %60 = vector.extract_strided_slice %14 {offsets = [0, 7, 0], sizes = [2, 1, 32], strides = [1, 1, 1]} : vector<2x8x32xf32> to vector<2x1x32xf32>
    %61 = vector.shape_cast %60 : vector<2x1x32xf32> to vector<2x32xf32>
    %62 = arith.addf %61, %59 : vector<2x32xf32>
    %63 = math.tanh %62 : vector<2x32xf32>
    %64 = arith.truncf %63 : vector<2x32xf32> to vector<2x32xbf16>
    %cst_17 = arith.constant dense<0.000000e+00> : vector<2x4xf32>
    %65 = tpu.matmul %64, %6, %cst_17 {dimension_numbers = #tpu.dot_dimension_numbers<[1], [0], [0], [1], [0, 0, 1, 1], [], []>} : vector<2x32xbf16>, vector<32x4xbf16>, vector<2x4xf32> -> vector<2x4xf32>
    %66 = vector.broadcast %7 : vector<1x4xf32> to vector<2x4xf32>
    %67 = arith.addf %65, %66 : vector<2x4xf32>
    %cst_18 = arith.constant dense<0xFF800000> : vector<2xf32>
    %68 = vector.multi_reduction <maximumf>, %67, %cst_18 [1] : vector<2x4xf32> to vector<2xf32>
    %69 = vector.shape_cast %68 : vector<2xf32> to vector<2x1xf32>
    %70 = vector.broadcast %69 : vector<2x1xf32> to vector<2x4xf32>
    %71 = arith.subf %67, %70 : vector<2x4xf32>
    %72 = math.exp %71 : vector<2x4xf32>
    %cst_19 = arith.constant dense<0.000000e+00> : vector<2xf32>
    %73 = vector.multi_reduction <add>, %72, %cst_19 [1] : vector<2x4xf32> to vector<2xf32>
    %74 = vector.shape_cast %73 : vector<2xf32> to vector<2x1xf32>
    %75 = tpu.reciprocal %74 {approx = true} : vector<2x1xf32> -> vector<2x1xf32>
    %76 = vector.broadcast %75 : vector<2x1xf32> to vector<2x4xf32>
    %77 = arith.mulf %72, %76 : vector<2x4xf32>
    %c0_20 = arith.constant 0 : index
    %c0_21 = arith.constant 0 : index
    %78 = vector.load %arg2[%c0_20, %c0_21] : memref<2x4xf32, #tpu.memory_space<vmem>>, vector<2x4xf32>
    tpu.vector_store %arg2[%c0_20, %c0_21], %77 {strides = array<i32>} : memref<2x4xf32, #tpu.memory_space<vmem>>, vector<2x4xf32>,
    return
  }
}

</mosaic_0001>

<bundles_post_ra>
// kernel: tpu_custom_call.1
= control target key start
LH: loop header
LB: loop body
LE: loop exit
PB: predicated region body
PF: predicated region fallthrough
CT: control target
= control target key end

     0   :  { %7 = vsyncpa [#allocation3], 0  ;;  %s571_s0 = inlined_call_operand.vmem [shape: f32[2,8,4], index: 0, kind: input, shape index: {}]   ;;  %s572_s1 = inlined_call_operand.hbm [shape: f32[88,128], index: 1, kind: input, shape index: {}]   ;;  %s573_s2 = inlined_call_operand.hbm [shape: f32[2,4], index: 2, kind: output, shape index: {}]  }
   0x1   :  { %8 = vsyncpa [#allocation4], 0  ;;  %s15_s11 = sshll.u32 %s572_s1, 4  ;;  %s500_s12 = smov [#allocation2]   ;;  %s16_s11 = int_to_ptr.hbm [resolvable:$true] %s15_s11 }
   0x2   :  { %s17_s13 = sshll.u32 %s500_s12, 4  ;;  %s501_s14 = smov 128   ;;  %s18_s13 = int_to_ptr.vmem [resolvable:$true] %s17_s13 }
   0x3   :  { %s502_s15 = smov 8  }
   0x4   :  { %23 = dma.hbm_to_vmem [thread:$0]  %s16_s11, 1408, %s18_s13, [#allocation3], %s501_s14, %s501_s14, %s502_s15  }
   0x5   :  { %496 = dma.done.wait [#allocation3], 1408  }
   0x6   :  { %497 = vsyncadd [#allocation3], 4294965888  ;;  %v33_v0 = vld [vmem:[#allocation2 + $0x18] sm:$0xff]  ;;  %v34_v1 = vld [vmem:[#allocation2 + $0x20] sm:$0xff]  ;;  %vm53_vm0 = vcmask 1041408   ;;  %vm49_vm1 = vcmask 31744  }
   0x7   :  { %v29_v2 = vld [vmem:[#allocation2] sm:$0xf]  ;;  %v36_v3 = vpack.c.bf16 %v34_v1, %v33_v0  ;;  %v46_v6 = vld [vmem:[%s571_s0 + $0x8] sm:$0xff]  ;;  %v32_v8 = vld [vmem:[#allocation2 + $0x10] sm:$0xff]  ;;  %v503_v12 = vmov 0   ;;  %vm103_vm2 = vcmask 1041409  }
   0x8   :  { %v30_v4 = vpack.c.bf16 %v29_v2, %v29_v2  ;;  %v45_v5 = vld [vmem:[%s571_s0] sm:$0xff]  ;;  %v31_v7 = vld [vmem:[#allocation2 + $0x8] sm:$0xff]  ;;  %vm71_vm3 = vcmask 261120   ;;  %vm366_vm4 = vcmask 25600   ;;  %s504_s0 = smov [#allocation5]   ;;  %s386_s22 = sshll.u32 %s573_s2, 4  ;;  %s387_s22 = int_to_ptr.hbm [resolvable:$true] %s386_s22 }
   0x9   :  { %81 = vmatpush.bf16.msra.mxu1 %v36_v3  ;;  %v47_v10 = vpack.c.bf16 %v46_v6, %v45_v5  ;;  %v35_v11 = vpack.c.bf16 %v32_v8, %v31_v7  ;;  %115 = vmatpush.bf16.msra.mxu2 %v36_v3  ;;  %v410_v13 = vld [vmem:[#allocation2 + $0x28] ss:$0 sm:$0xff]  ;;  %s384_s19 = sshll.u32 %s504_s0, 4  ;;  %s385_s19 = int_to_ptr.vmem [resolvable:$true] %s384_s19 }
   0xa   :  { %v55_v9 = vsel %vm53_vm0, %v30_v4, 0  ;;  %148 = vmatpush.bf16.msra.mxu3 %v36_v3 }
   0xb   :  { %64 = vmatpush.bf16.msra.mxu0 %v55_v9 }
   0xd   :  { %82 = vmatpush.bf16.msra.mxu1 %v35_v11  ;;  %116 = vmatpush.bf16.msra.mxu2 %v35_v11 }
   0xe   :  { %396 = vmatmul.msk.bf16.vlgmr.msra.gmra.mxu0 %vm49_vm1, %v47_v10  ;;  %149 = vmatpush.bf16.msra.mxu3 %v35_v11 }
   0xf   :  { %183 = vmatpush.bf16.msrb.mxu0 %v36_v3 }
  0x10   :  { %83 = vmatmul.bf16.vlgmr.msra.gmra.mxu1 %v503_v12 }
  0x11   :  { %218 = vmatpush.bf16.msrb.mxu1 %v36_v3  ;;  %253 = vmatpush.bf16.msrb.mxu2 %v36_v3 }
  0x12   :  { %288 = vmatpush.bf16.msrb.mxu3 %v36_v3 }
  0x13   :  { %184 = vmatpush.bf16.msrb.mxu0 %v35_v11 }
  0x15   :  { %219 = vmatpush.bf16.msrb.mxu1 %v35_v11  ;;  %254 = vmatpush.bf16.msrb.mxu2 %v35_v11 }
  0x16   :  { %289 = vmatpush.bf16.msrb.mxu3 %v35_v11 }
  0x17   :  { %323 = vmatpush.bf16.msra.mxu0 %v36_v3 }
  0x1b   :  { %324 = vmatpush.bf16.msra.mxu0 %v35_v11 }
  0x8b   :  { %v66_v14 = vpop.f32.mrf.mxu0 }
  0x8c   :  { %v529_v15 = vadd.f32 %v410_v13, %v66_v14 }
  0x8d   :  { %v84_v16 = vpop.f32.mrf.mxu1 }
  0x8e   :  { %v89_v17 = vrot.slane %v84_v16, 1  ;;  %v92_v18 = vadd.f32 %v84_v16, %v529_v15 }
  0x90   :  { %412 = vtanh.f32 %v92_v18 }
  0x93   :  { %v68_v19 = vpop.f32.mrf.mxu0 }
  0x94   :  { %v532_v20 = vadd.f32 %v410_v13, %v68_v19 }
  0x95   :  { %v86_v21 = vpop.f32.mrf.mxu1 }
  0x96   :  { %v93_v22 = vadd.f32 %v89_v17, %v532_v20  ;;  %v413_v23 = vpop.eup %412 }
  0x97   :  { %v96_v25 = vpack.c.bf16 %v413_v23, %v413_v23 }
  0x98   :  { %414 = vtanh.f32 %v93_v22 }
  0x99   :  { %v100_v28 = vunpack.c.l.b16 %v96_v25 }
  0x9e   :  { %v415_v24 = vpop.eup %414 }
  0x9f   :  { %v97_v26 = vpack.c.bf16 %v415_v24, %v415_v24 }
  0xa1   :  { %v101_v27 = vunpack.c.l.b16 %v97_v26 }
  0xa3   :  { %v102_v29 = vrot.slane %v101_v27, 7 }
  0xa5   :  { %v104_v30 = vsel %vm103_vm2, %v102_v29, %v100_v28 }
  0xa6   :  { %v105_v31 = vpack.c.b16 %v104_v30, %v104_v30 }
  0xa8   :  { %397 = vmatmul.msk.bf16.vlgmr.msra.gmra.mxu2 %vm71_vm3, %v105_v31 }
 0x12b   :  { %v118_v32 = vpop.f32.mrf.mxu2 }
 0x12c   :  { %v123_v33 = vrot.slane %v118_v32, 7  ;;  %v127_v34 = vadd.f32 %v118_v32, %v532_v20 }
 0x12e   :  { %v126_v35 = vadd.f32 %v123_v33, %v529_v15  ;;  %416 = vtanh.f32 %v127_v34 }
 0x130   :  { %418 = vtanh.f32 %v126_v35 }
 0x133   :  { %v120_v36 = vpop.f32.mrf.mxu2 }
 0x134   :  { %v417_v37 = vpop.eup %416 }
 0x135   :  { %v131_v40 = vpack.c.bf16 %v417_v37, %v417_v37 }
 0x136   :  { %v419_v38 = vpop.eup %418 }
 0x137   :  { %v130_v39 = vpack.c.bf16 %v419_v38, %v419_v38  ;;  %v135_v42 = vunpack.c.l.b16 %v131_v40 }
 0x139   :  { %v134_v41 = vunpack.c.l.b16 %v130_v39 }
 0x13b   :  { %v136_v43 = vrot.slane %v134_v41, 1 }
 0x13d   :  { %v137_v44 = vsel %vm103_vm2, %v135_v42, %v136_v43 }
 0x13e   :  { %v138_v45 = vpack.c.b16 %v137_v44, %v137_v44 }
 0x140   :  { %398 = vmatmul.msk.bf16.vlgmr.msra.gmra.mxu3 %vm71_vm3, %v138_v45 }
 0x1c3   :  { %v151_v46 = vpop.f32.mrf.mxu3 }
 0x1c4   :  { %v156_v47 = vrot.slane %v151_v46, 6  ;;  %v157_v48 = vrot.slane %v151_v46, 7 }
 0x1c6   :  { %v160_v49 = vadd.f32 %v156_v47, %v529_v15  ;;  %v161_v50 = vadd.f32 %v157_v48, %v532_v20 }
 0x1c8   :  { %420 = vtanh.f32 %v160_v49 }
 0x1c9   :  { %422 = vtanh.f32 %v161_v50 }
 0x1cb   :  { %v153_v51 = vpop.f32.mrf.mxu3 }
 0x1ce   :  { %v421_v52 = vpop.eup %420 }
 0x1cf   :  { %v423_v53 = vpop.eup %422  ;;  %v164_v54 = vpack.c.bf16 %v421_v52, %v421_v52 }
 0x1d0   :  { %v165_v55 = vpack.c.bf16 %v423_v53, %v423_v53 }
 0x1d1   :  { %v168_v56 = vunpack.c.l.b16 %v164_v54 }
 0x1d2   :  { %v169_v57 = vunpack.c.l.b16 %v165_v55 }
 0x1d3   :  { %v170_v58 = vrot.slane %v168_v56, 2 }
 0x1d4   :  { %v171_v59 = vrot.slane %v169_v57, 1 }
 0x1d6   :  { %v172_v60 = vsel %vm103_vm2, %v171_v59, %v170_v58 }
 0x1d7   :  { %v173_v61 = vpack.c.b16 %v172_v60, %v172_v60 }
 0x1d9   :  { %399 = vmatmul.msk.bf16.vlgmr.msrb.gmra.mxu0 %vm71_vm3, %v173_v61 }
 0x256   :  { %v186_v62 = vpop.f32.mrf.mxu0 }
 0x257   :  { %v191_v63 = vrot.slane %v186_v62, 5  ;;  %v192_v0 = vrot.slane %v186_v62, 6 }
 0x259   :  { %v195_v1 = vadd.f32 %v191_v63, %v529_v15  ;;  %v196_v2 = vadd.f32 %v192_v0, %v532_v20  ;;  %v40_v0 = vld [vmem:[#allocation2 + $0x40] sm:$0xff] }
 0x25b   :  { %424 = vtanh.f32 %v195_v1  ;;  %v41_v1 = vld [vmem:[#allocation2 + $0x48] sm:$0xff] }
 0x25c   :  { %426 = vtanh.f32 %v196_v2  ;;  %v43_v2 = vpack.c.bf16 %v41_v1, %v40_v0 }
 0x25e   :  { %v188_v3 = vpop.f32.mrf.mxu0  ;;  %359 = vmatpush.bf16.msra.mxu1 %v43_v2 }
 0x25f   :  { %v38_v3 = vld [vmem:[#allocation2 + $0x30] sm:$0xff] }
 0x261   :  { %v425_v4 = vpop.eup %424 }
 0x262   :  { %v427_v5 = vpop.eup %426  ;;  %v199_v6 = vpack.c.bf16 %v425_v4, %v425_v4  ;;  %v39_v4 = vld [vmem:[#allocation2 + $0x38] sm:$0xff] }
 0x263   :  { %v200_v7 = vpack.c.bf16 %v427_v5, %v427_v5  ;;  %v42_v5 = vpack.c.bf16 %v39_v4, %v38_v3 }
 0x264   :  { %v203_v8 = vunpack.c.l.b16 %v199_v6 }
 0x265   :  { %v204_v9 = vunpack.c.l.b16 %v200_v7  ;;  %360 = vmatpush.bf16.msra.mxu1 %v42_v5 }
 0x266   :  { %v205_v10 = vrot.slane %v203_v8, 3 }
 0x267   :  { %v206_v11 = vrot.slane %v204_v9, 2 }
 0x269   :  { %v207_v12 = vsel %vm103_vm2, %v206_v11, %v205_v10 }
 0x26a   :  { %v208_v13 = vpack.c.b16 %v207_v12, %v207_v12 }
 0x26c   :  { %400 = vmatmul.msk.bf16.vlgmr.msrb.gmra.mxu1 %vm71_vm3, %v208_v13 }
 0x2e9   :  { %v221_v14 = vpop.f32.mrf.mxu1 }
 0x2ea   :  { %v226_v16 = vrot.slane %v221_v14, 4  ;;  %v227_v17 = vrot.slane %v221_v14, 5 }
 0x2ec   :  { %v230_v18 = vadd.f32 %v226_v16, %v529_v15  ;;  %v231_v19 = vadd.f32 %v227_v17, %v532_v20 }
 0x2ee   :  { %428 = vtanh.f32 %v230_v18 }
 0x2ef   :  { %430 = vtanh.f32 %v231_v19 }
 0x2f1   :  { %v223_v21 = vpop.f32.mrf.mxu1 }
 0x2f4   :  { %v429_v22 = vpop.eup %428 }
 0x2f5   :  { %v431_v23 = vpop.eup %430  ;;  %v234_v24 = vpack.c.bf16 %v429_v22, %v429_v22 }
 0x2f6   :  { %v235_v25 = vpack.c.bf16 %v431_v23, %v431_v23 }
 0x2f7   :  { %v238_v26 = vunpack.c.l.b16 %v234_v24  ;;  %v411_v24 = vld [vmem:[#allocation2 + $0x50] ss:$0 sm:$0xff] }
 0x2f8   :  { %v239_v27 = vunpack.c.l.b16 %v235_v25 }
 0x2f9   :  { %v240_v28 = vrot.slane %v238_v26, 4 }
 0x2fa   :  { %v241_v29 = vrot.slane %v239_v27, 3 }
 0x2fc   :  { %v242_v30 = vsel %vm103_vm2, %v241_v29, %v240_v28 }
 0x2fd   :  { %v243_v31 = vpack.c.b16 %v242_v30, %v242_v30 }
 0x2ff   :  { %401 = vmatmul.msk.bf16.vlgmr.msrb.gmra.mxu2 %vm71_vm3, %v243_v31 }
 0x382   :  { %v256_v32 = vpop.f32.mrf.mxu2 }
 0x383   :  { %v261_v33 = vrot.slane %v256_v32, 3  ;;  %v262_v34 = vrot.slane %v256_v32, 4 }
 0x385   :  { %v265_v35 = vadd.f32 %v261_v33, %v529_v15  ;;  %v266_v36 = vadd.f32 %v262_v34, %v532_v20 }
 0x387   :  { %432 = vtanh.f32 %v265_v35 }
 0x388   :  { %434 = vtanh.f32 %v266_v36 }
 0x38a   :  { %v258_v37 = vpop.f32.mrf.mxu2 }
 0x38d   :  { %v433_v38 = vpop.eup %432 }
 0x38e   :  { %v435_v39 = vpop.eup %434  ;;  %v269_v40 = vpack.c.bf16 %v433_v38, %v433_v38 }
 0x38f   :  { %v270_v41 = vpack.c.bf16 %v435_v39, %v435_v39 }
 0x390   :  { %v273_v42 = vunpack.c.l.b16 %v269_v40 }
 0x391   :  { %v274_v43 = vunpack.c.l.b16 %v270_v41 }
 0x392   :  { %v275_v44 = vrot.slane %v273_v42, 5 }
 0x393   :  { %v276_v45 = vrot.slane %v274_v43, 4 }
 0x395   :  { %v277_v46 = vsel %vm103_vm2, %v276_v45, %v275_v44 }
 0x396   :  { %v278_v47 = vpack.c.b16 %v277_v46, %v277_v46 }
 0x398   :  { %402 = vmatmul.msk.bf16.vlgmr.msrb.gmra.mxu3 %vm71_vm3, %v278_v47 }
 0x41b   :  { %v291_v48 = vpop.f32.mrf.mxu3 }
 0x41c   :  { %v296_v49 = vrot.slane %v291_v48, 2  ;;  %v297_v50 = vrot.slane %v291_v48, 3 }
 0x41e   :  { %v300_v51 = vadd.f32 %v296_v49, %v529_v15  ;;  %v301_v52 = vadd.f32 %v297_v50, %v532_v20 }
 0x420   :  { %436 = vtanh.f32 %v300_v51 }
 0x421   :  { %438 = vtanh.f32 %v301_v52 }
 0x423   :  { %v293_v53 = vpop.f32.mrf.mxu3 }
 0x426   :  { %v437_v54 = vpop.eup %436 }
 0x427   :  { %v439_v55 = vpop.eup %438  ;;  %v304_v56 = vpack.c.bf16 %v437_v54, %v437_v54 }
 0x428   :  { %v305_v57 = vpack.c.bf16 %v439_v55, %v439_v55 }
 0x429   :  { %v308_v58 = vunpack.c.l.b16 %v304_v56 }
 0x42a   :  { %v309_v59 = vunpack.c.l.b16 %v305_v57 }
 0x42b   :  { %v310_v60 = vrot.slane %v308_v58, 6 }
 0x42c   :  { %v311_v61 = vrot.slane %v309_v59, 5 }
 0x42e   :  { %v312_v62 = vsel %vm103_vm2, %v311_v61, %v310_v60 }
 0x42f   :  { %v313_v63 = vpack.c.b16 %v312_v62, %v312_v62 }
 0x431   :  { %403 = vmatmul.msk.bf16.vlgmr.msra.gmra.mxu0 %vm71_vm3, %v313_v63 }
 0x4ae   :  { %v326_v6 = vpop.f32.mrf.mxu0 }
 0x4af   :  { %v331_v7 = vrot.slane %v326_v6, 1  ;;  %v332_v8 = vrot.slane %v326_v6, 2 }
 0x4b1   :  { %v335_v9 = vadd.f32 %v331_v7, %v529_v15  ;;  %v336_v10 = vadd.f32 %v332_v8, %v532_v20 }
 0x4b3   :  { %440 = vtanh.f32 %v335_v9 }
 0x4b4   :  { %442 = vtanh.f32 %v336_v10 }
 0x4b6   :  { %v328_v11 = vpop.f32.mrf.mxu0 }
 0x4b9   :  { %v441_v12 = vpop.eup %440 }
 0x4ba   :  { %v443_v13 = vpop.eup %442  ;;  %v339_v14 = vpack.c.bf16 %v441_v12, %v441_v12 }
 0x4bb   :  { %v340_v16 = vpack.c.bf16 %v443_v13, %v443_v13 }
 0x4bc   :  { %v344_v17 = vunpack.c.l.b16 %v339_v14 }
 0x4bd   :  { %v345_v18 = vunpack.c.l.b16 %v340_v16 }
 0x4be   :  { %v346_v19 = vrot.slane %v344_v17, 7 }
 0x4bf   :  { %v347_v21 = vrot.slane %v345_v18, 6 }
 0x4c1   :  { %v348_v22 = vsel %vm103_vm2, %v347_v21, %v346_v19 }
 0x4c2   :  { %v349_v23 = vpack.c.b16 %v348_v22, %v348_v22 }
 0x4c4   :  { %404 = vmatmul.msk.bf16.vlgmr.msra.gmra.mxu1 %vm71_vm3, %v349_v23 }
 0x541   :  { %v362_v15 = vpop.f32.mrf.mxu1 }
 0x542   :  { %v363_v20 = vadd.f32 %v411_v24, %v362_v15 }
 0x544   :  { %v367_v25 = vsel %vm366_vm4, %v363_v20, -inf }
 0x545   :  { %368 = vmax.xlane.f32.xlu0 %v367_v25 }
 0x549   :  { %v364_v26 = vpop.f32.mrf.mxu1 }
 0x5b8   :  { %v369_v27 = vpop.xlane.xlu0 %368 }
 0x5b9   :  { %v370_v28 = vsub.f32 %v363_v20, %v369_v27 }
 0x5bb   :  { %v371_v29 = vmul.f32 1.442695, %v370_v28 }
 0x5bd   :  { %444 = vpow2.f32 %v371_v29 }
 0x5c3   :  { %v445_v30 = vpop.eup %444 }
 0x5c4   :  { %v373_v31 = vsel %vm366_vm4, %v445_v30, 0.0 }
 0x5c5   :  { %374 = vadd.xlane.f32.xlu0 %v373_v31 }
 0x638   :  { %v375_v32 = vpop.xlane.xlu0 %374 }
 0x639   :  { %446 = vrcp.f32 %v375_v32 }
 0x63f   :  { %v447_v33 = vpop.eup %446 }
 0x640   :  { %v377_v34 = vmul.f32 %v447_v33, %v445_v30 }
 0x642   :  { %378 = vst.msk [vmem:[#allocation5] sm:$0x3] %vm366_vm4, %v377_v34 }
 0x643   :  { %389 = dma.vmem_to_hbm [thread:$0]  %s385_s19, 32, %s387_s22, [#allocation4]  }
 0x644   :  { %498 = dma.done.wait [#allocation4], 32  }
 0x645   :  { %499 = vsyncadd [#allocation4], 4294967264 }
 0x646   :  { %394 = vsyncpa [#allocation3], 1 }
 0x647   :  { %395 = vsyncpa [#allocation4], 1 }

</bundles_post_ra>
